<compile_context>
chip_gen: v7x
topology: tpu7x:2x2x1
jax: 0.10.0
libtpu: 0.0.40
codegen_flags: <defaults>
</compile_context>

<pallas_src>
import functools

import jax
import jax.numpy as jnp
from jax.experimental import pallas as pl
from jax.experimental.pallas import tpu as pltpu

NEG_SLOPE = 0.01   # nn.LeakyReLU default negative_slope
BN_EPS = 1e-5      # nn.BatchNorm2d default eps

# Off-centre taps of the 3x3 depthwise stencil, in (dh, dw) order.
# The precomputed boundary masks use exactly this ordering.
_OFFS = ((-1, -1), (-1, 0), (-1, 1), (0, -1), (0, 1), (1, -1), (1, 0), (1, 1))


def _leaky(x):
    # Exact LeakyReLU for 0 < slope < 1: mul + max (2 VALU ops, no select).
    return jnp.maximum(x, NEG_SLOPE * x)


def ssconv_kernel(x_ref, par_ref, mask_ref, out_ref, *, W):
    """One grid step: Bt images x CoutT output channels, spatial on lanes.

    x_ref:    (Bt, Cin, HWp)      input slab, NCHW with spatial flattened+padded
    par_ref:  (CoutT, Cin + 11)   [ pw (BN folded) | pb | 9 dw taps | dw bias ]
    mask_ref: (8, HWp)            0/1 f32 boundary masks, one per off-centre tap
    out_ref:  (Bt, CoutT, HWp)
    """
    Bt, Cin, HWp = x_ref.shape
    CoutT = out_ref.shape[1]

    par = par_ref[...]
    pw = par[:, :Cin]                      # (CoutT, Cin)
    pb = par[:, Cin:Cin + 1]               # (CoutT, 1)
    taps = par[:, Cin + 1:Cin + 10]        # (CoutT, 9)
    dwb = par[:, Cin + 10:Cin + 11]        # (CoutT, 1)
    masks = mask_ref[...]                  # (8, HWp), loaded once

    # MXU only when it would be reasonably utilised; otherwise unrolled VPU MAC.
    use_vpu = Cin <= 16 or (CoutT <= 8 and Cin <= 64)

    for b in range(Bt):                    # Bt kept small -> static unroll is fine
        x = x_ref[b].astype(jnp.float32)   # (Cin, HWp), lane-dense

        # ---- 1x1 pointwise conv (BatchNorm pre-folded) + LeakyReLU ----------
        if use_vpu:
            z = pb + pw[:, 0:1] * x[0:1, :]
            for c in range(1, Cin):
                z = z + pw[:, c:c + 1] * x[c:c + 1, :]
        else:
            z = jnp.dot(pw.astype(jnp.bfloat16), x.astype(jnp.bfloat16),
                        preferred_element_type=jnp.float32) + pb
        z = _leaky(z)                      # (CoutT, HWp)

        # ---- depthwise 3x3, stride 1, padding 1, + bias + LeakyReLU ----------
        # 9 static lane-rolls of the flattened spatial axis; wrap-around taps
        # are zeroed by the precomputed masks.  No padded scratch, no iota.
        acc = z * taps[:, 4:5] + dwb       # centre tap + bias
        for idx, (dh, dw) in enumerate(_OFFS):
            k = (dh + 1) * 3 + (dw + 1)
            # out[o] needs in[o + dh*W + dw]  =>  roll by -(dh*W + dw).
            shifted = pltpu.roll(z, shift=(-(dh * W + dw)) % HWp, axis=1)
            acc = acc + (shifted * masks[idx:idx + 1, :]) * taps[:, k:k + 1]

        out_ref[b] = _leaky(acc).astype(out_ref.dtype)


def _pick_batch_tile(n, per_image_bytes, budget=1 << 20):
    """Largest divisor of n whose block fits the budget, keeping >= 2 grid
    steps over the batch when n >= 2 (megacore / v7x second TensorCore)."""
    bt = 1
    for cand in range(1, n + 1):
        if n % cand:
            continue
        if cand * per_image_bytes > budget:
            break
        if n > 1 and n // cand < 2:
            continue
        bt = cand
    return bt


def _pick_cout_tile(cout):
    if cout <= 128:
        return cout
    for t in (128, 64, 32, 16, 8):
        if cout % t == 0:
            return t
    return cout


@jax.jit
def ssconv_forward(x_nchw, gamma, beta, point_w, depth_w, depth_b):
    """x_nchw: (N, Cin, H, W); point_w: (Cout, Cin); depth_w: (Cout, 3, 3).

    Output dtype follows the input dtype: feeding bf16 activations halves HBM
    traffic on v5e/v6e (the kernel still accumulates in f32)."""
    N, Cin, H, W = x_nchw.shape
    Cout = point_w.shape[0]
    HW = H * W
    HWp = ((HW + 127) // 128) * 128        # lane-dense, unmasked stores
    out_dtype = x_nchw.dtype

    xf = x_nchw if x_nchw.dtype == jnp.float32 else x_nchw.astype(jnp.float32)

    # --- BatchNorm2d (training-mode batch stats, biased variance) folded into
    # the 1x1 conv.  Single pass: mean and E[x^2] together; under jit both
    # reductions fuse into one read of x.
    cnt = float(N * H * W)
    s1 = jnp.sum(xf, axis=(0, 2, 3))
    s2 = jnp.sum(xf * xf, axis=(0, 2, 3))
    mean = s1 / cnt
    var = jnp.maximum(s2 / cnt - mean * mean, 0.0)
    scale = gamma.astype(jnp.float32) * jax.lax.rsqrt(var + BN_EPS)
    shift = beta.astype(jnp.float32) - mean * scale
    pw_eff = point_w.astype(jnp.float32) * scale[None, :]                   # (Cout, Cin)
    pb_eff = jnp.sum(point_w.astype(jnp.float32) * shift[None, :], axis=1)  # (Cout,)
    # NOTE: point_conv has bias=False in the PyTorch module, so pb_eff is the
    # BN shift only; the depthwise bias is carried separately in the pack.

    # Pack per-output-channel params into one tile: [pw | pb | 9 taps | dw bias].
    params = jnp.concatenate(
        [pw_eff,
         pb_eff[:, None],
         depth_w.reshape(Cout, 9).astype(jnp.float32),
         depth_b.reshape(Cout, 1).astype(jnp.float32)], axis=1)   # (Cout, Cin+11)

    # Precomputed 0/1 boundary masks for the 8 off-centre taps (kills the
    # wrap-around of the flattened-spatial roll and the padded lanes).
    pos = jnp.arange(HW, dtype=jnp.int32)
    h_idx = pos // W
    w_idx = pos - h_idx * W
    not_top, not_bot = h_idx >= 1, h_idx < H - 1
    not_left, not_right = w_idx >= 1, w_idx < W - 1
    rows = []
    for dh, dw in _OFFS:
        m = jnp.ones((HW,), jnp.bool_)
        if dh == -1:
            m = m & not_top
        if dh == 1:
            m = m & not_bot
        if dw == -1:
            m = m & not_left
        if dw == 1:
            m = m & not_right
        rows.append(m)
    masks = jnp.stack(rows).astype(jnp.float32)                   # (8, HW)
    if HWp != HW:
        masks = jnp.pad(masks, ((0, 0), (0, HWp - HW)))

    # Lane-dense activation slabs: stay NCHW, spatial flattened onto lanes.
    x_flat = xf.reshape(N, Cin, HW)
    if HWp != HW:
        x_flat = jnp.pad(x_flat, ((0, 0), (0, 0), (0, HWp - HW)))

    cout_t = _pick_cout_tile(Cout)
    per_image_bytes = 4 * (Cin + cout_t) * HWp
    bt = _pick_batch_tile(N, per_image_bytes)
    grid = (N // bt, Cout // cout_t)

    kernel = functools.partial(ssconv_kernel, W=W)

    # TODO(synk): for very large H*W, add an H-tiled grid axis with a 1-row halo
    # (manual overlapped DMA) so per-step VMEM stays bounded on v7x (64 MiB).
    out_flat = pl.pallas_call(
        kernel,
        out_shape=jax.ShapeDtypeStruct((N, Cout, HWp), out_dtype),
        grid=grid,
        in_specs=[
            pl.BlockSpec((bt, Cin, HWp), lambda n, co: (n, 0, 0)),
            pl.BlockSpec((cout_t, Cin + 11), lambda n, co: (co, 0)),
            pl.BlockSpec((8, HWp), lambda n, co: (0, 0)),
        ],
        out_specs=pl.BlockSpec((bt, cout_t, HWp), lambda n, co: (n, co, 0)),
        compiler_params=pltpu.CompilerParams(
            dimension_semantics=("parallel", "parallel"),
            vmem_limit_bytes=32 * 1024 * 1024,
        ),
        cost_estimate=pl.CostEstimate(
            flops=2 * N * HW * Cin * Cout + (2 * 9 + 4) * N * HW * Cout,
            transcendentals=0,
            bytes_accessed=4 * (N * (Cin + Cout) * HWp
                                + Cout * (Cin + 11) + 8 * HWp),
        ),
    )(x_flat, params, masks)

    out = out_flat[:, :, :HW] if HWp != HW else out_flat
    return out.reshape(N, Cout, H, W)


def ssconv_reference(x, gamma, beta, point_w, depth_w, depth_b):
    """Pure-JAX NCHW reference mirroring the PyTorch module (training-mode BN)."""
    N, Cin, H, W = x.shape
    Cout = point_w.shape[0]
    mean = jnp.mean(x, axis=(0, 2, 3), keepdims=True)
    var = jnp.mean((x - mean) ** 2, axis=(0, 2, 3), keepdims=True)
    y = (x - mean) / jnp.sqrt(var + BN_EPS)
    y = y * gamma.reshape(1, Cin, 1, 1) + beta.reshape(1, Cin, 1, 1)
    z = jnp.einsum('oc,nchw->nohw', point_w, y,
                   precision=jax.lax.Precision.HIGHEST)
    z = _leaky(z)
    zp = jnp.pad(z, ((0, 0), (0, 0), (1, 1), (1, 1)))
    acc = jnp.zeros((N, Cout, H, W), jnp.float32) + depth_b.reshape(1, Cout, 1, 1)
    for kh in range(3):
        for kw in range(3):
            acc = acc + zp[:, :, kh:kh + H, kw:kw + W] * \
                depth_w[:, kh, kw].reshape(1, Cout, 1, 1)
    return _leaky(acc)


if __name__ == "__main__":
    N, Cin, Cout, H, W = 2, 4, 8, 16, 16

    key = jax.random.PRNGKey(0)
    kx, kpw, kdw, kdb, kg, kb = jax.random.split(key, 6)

    x = jax.random.normal(kx, (N, Cin, H, W), jnp.float32)
    point_w = 0.3 * jax.random.normal(kpw, (Cout, Cin), jnp.float32)   # 1x1 conv (Cout,Cin,1,1) squeezed
    depth_w = 0.3 * jax.random.normal(kdw, (Cout, 3, 3), jnp.float32)  # depthwise (Cout,1,3,3) squeezed
    depth_b = 0.1 * jax.random.normal(kdb, (Cout,), jnp.float32)
    gamma = 1.0 + 0.1 * jax.random.normal(kg, (Cin,), jnp.float32)     # BN affine weight
    beta = 0.1 * jax.random.normal(kb, (Cin,), jnp.float32)            # BN affine bias

    out = jax.block_until_ready(
        ssconv_forward(x, gamma, beta, point_w, depth_w, depth_b))
    ref = ssconv_reference(x, gamma, beta, point_w, depth_w, depth_b)

    assert out.shape == (N, Cout, H, W), out.shape
    assert jnp.allclose(out, ref, atol=1e-2, rtol=1e-2), \
        float(jnp.max(jnp.abs(out - ref)))
    print("KERNEL_OK")
</pallas_src>

<mosaic_0001>
module attributes {stable_mosaic.version = 11 : i64} {
  func.func @ssconv_kernel(%arg0: i32, %arg1: i32, %arg2: memref<1x4x256xf32, #tpu.memory_space<vmem>>, %arg3: memref<8x15xf32, #tpu.memory_space<vmem>>, %arg4: memref<8x256xf32, #tpu.memory_space<vmem>>, %arg5: memref<1x8x256xf32, #tpu.memory_space<vmem>>) attributes {dimension_semantics = [#tpu.dimension_semantics<parallel>, #tpu.dimension_semantics<parallel>], iteration_bounds = array<i64: 2, 1>, scalar_prefetch = 0 : i64, scratch_operands = 0 : i64, tpu.core_type = #tpu.core_type<tc>, window_params = [{transform_indices = @transform_0, window_bounds = array<i64: 1, 4, 256>}, {transform_indices = @transform_1, window_bounds = array<i64: 8, 15>}, {pipeline_mode = #tpu.pipeline_mode<synchronous>, transform_indices = @transform_2, window_bounds = array<i64: 8, 256>}, {transform_indices = @transform_3, window_bounds = array<i64: 1, 8, 256>}]} {
    %c0 = arith.constant 0 : index
    %c0_0 = arith.constant 0 : index
    %0 = vector.load %arg3[%c0, %c0_0] : memref<8x15xf32, #tpu.memory_space<vmem>>, vector<8x15xf32>
    %1 = vector.extract_strided_slice %0 {offsets = [0, 0], sizes = [8, 4], strides = [1, 1]} : vector<8x15xf32> to vector<8x4xf32>
    %2 = vector.extract_strided_slice %0 {offsets = [0, 4], sizes = [8, 1], strides = [1, 1]} : vector<8x15xf32> to vector<8x1xf32>
    %3 = vector.extract_strided_slice %0 {offsets = [0, 5], sizes = [8, 9], strides = [1, 1]} : vector<8x15xf32> to vector<8x9xf32>
    %4 = vector.extract_strided_slice %0 {offsets = [0, 14], sizes = [8, 1], strides = [1, 1]} : vector<8x15xf32> to vector<8x1xf32>
    %c0_1 = arith.constant 0 : index
    %c0_2 = arith.constant 0 : index
    %5 = vector.load %arg4[%c0_1, %c0_2] : memref<8x256xf32, #tpu.memory_space<vmem>>, vector<8x256xf32>
    %c0_3 = arith.constant 0 : index
    %c0_4 = arith.constant 0 : index
    %c0_5 = arith.constant 0 : index
    %6 = vector.load %arg2[%c0_3, %c0_4, %c0_5] : memref<1x4x256xf32, #tpu.memory_space<vmem>>, vector<1x4x256xf32>
    %7 = vector.shape_cast %6 : vector<1x4x256xf32> to vector<4x256xf32>
    %8 = vector.extract_strided_slice %1 {offsets = [0, 0], sizes = [8, 1], strides = [1, 1]} : vector<8x4xf32> to vector<8x1xf32>
    %9 = vector.extract_strided_slice %7 {offsets = [0, 0], sizes = [1, 256], strides = [1, 1]} : vector<4x256xf32> to vector<1x256xf32>
    %10 = vector.broadcast %8 : vector<8x1xf32> to vector<8x256xf32>
    %11 = vector.broadcast %9 : vector<1x256xf32> to vector<8x256xf32>
    %12 = arith.mulf %10, %11 : vector<8x256xf32>
    %13 = vector.broadcast %2 : vector<8x1xf32> to vector<8x256xf32>
    %14 = arith.addf %13, %12 : vector<8x256xf32>
    %15 = vector.extract_strided_slice %1 {offsets = [0, 1], sizes = [8, 1], strides = [1, 1]} : vector<8x4xf32> to vector<8x1xf32>
    %16 = vector.extract_strided_slice %7 {offsets = [1, 0], sizes = [1, 256], strides = [1, 1]} : vector<4x256xf32> to vector<1x256xf32>
    %17 = vector.broadcast %15 : vector<8x1xf32> to vector<8x256xf32>
    %18 = vector.broadcast %16 : vector<1x256xf32> to vector<8x256xf32>
    %19 = arith.mulf %17, %18 : vector<8x256xf32>
    %20 = arith.addf %14, %19 : vector<8x256xf32>
    %21 = vector.extract_strided_slice %1 {offsets = [0, 2], sizes = [8, 1], strides = [1, 1]} : vector<8x4xf32> to vector<8x1xf32>
    %22 = vector.extract_strided_slice %7 {offsets = [2, 0], sizes = [1, 256], strides = [1, 1]} : vector<4x256xf32> to vector<1x256xf32>
    %23 = vector.broadcast %21 : vector<8x1xf32> to vector<8x256xf32>
    %24 = vector.broadcast %22 : vector<1x256xf32> to vector<8x256xf32>
    %25 = arith.mulf %23, %24 : vector<8x256xf32>
    %26 = arith.addf %20, %25 : vector<8x256xf32>
    %27 = vector.extract_strided_slice %1 {offsets = [0, 3], sizes = [8, 1], strides = [1, 1]} : vector<8x4xf32> to vector<8x1xf32>
    %28 = vector.extract_strided_slice %7 {offsets = [3, 0], sizes = [1, 256], strides = [1, 1]} : vector<4x256xf32> to vector<1x256xf32>
    %29 = vector.broadcast %27 : vector<8x1xf32> to vector<8x256xf32>
    %30 = vector.broadcast %28 : vector<1x256xf32> to vector<8x256xf32>
    %31 = arith.mulf %29, %30 : vector<8x256xf32>
    %32 = arith.addf %26, %31 : vector<8x256xf32>
    %cst = arith.constant 0.00999999977 : f32
    %33 = vector.broadcast %cst : f32 to vector<8x256xf32>
    %34 = arith.mulf %33, %32 : vector<8x256xf32>
    %35 = arith.maximumf %32, %34 : vector<8x256xf32>
    %36 = vector.extract_strided_slice %3 {offsets = [0, 4], sizes = [8, 1], strides = [1, 1]} : vector<8x9xf32> to vector<8x1xf32>
    %37 = vector.broadcast %36 : vector<8x1xf32> to vector<8x256xf32>
    %38 = arith.mulf %35, %37 : vector<8x256xf32>
    %39 = vector.broadcast %4 : vector<8x1xf32> to vector<8x256xf32>
    %40 = arith.addf %38, %39 : vector<8x256xf32>
    %c17_i32 = arith.constant 17 : i32
    %41 = tpu.dynamic_rotate %35 by %c17_i32 dim 1 : vector<8x256xf32>, i32 -> vector<8x256xf32>
    %42 = vector.extract_strided_slice %5 {offsets = [0, 0], sizes = [1, 256], strides = [1, 1]} : vector<8x256xf32> to vector<1x256xf32>
    %43 = vector.broadcast %42 : vector<1x256xf32> to vector<8x256xf32>
    %44 = arith.mulf %41, %43 : vector<8x256xf32>
    %45 = vector.extract_strided_slice %3 {offsets = [0, 0], sizes = [8, 1], strides = [1, 1]} : vector<8x9xf32> to vector<8x1xf32>
    %46 = vector.broadcast %45 : vector<8x1xf32> to vector<8x256xf32>
    %47 = arith.mulf %44, %46 : vector<8x256xf32>
    %48 = arith.addf %40, %47 : vector<8x256xf32>
    %c16_i32 = arith.constant 16 : i32
    %49 = tpu.dynamic_rotate %35 by %c16_i32 dim 1 : vector<8x256xf32>, i32 -> vector<8x256xf32>
    %50 = vector.extract_strided_slice %5 {offsets = [1, 0], sizes = [1, 256], strides = [1, 1]} : vector<8x256xf32> to vector<1x256xf32>
    %51 = vector.broadcast %50 : vector<1x256xf32> to vector<8x256xf32>
    %52 = arith.mulf %49, %51 : vector<8x256xf32>
    %53 = vector.extract_strided_slice %3 {offsets = [0, 1], sizes = [8, 1], strides = [1, 1]} : vector<8x9xf32> to vector<8x1xf32>
    %54 = vector.broadcast %53 : vector<8x1xf32> to vector<8x256xf32>
    %55 = arith.mulf %52, %54 : vector<8x256xf32>
    %56 = arith.addf %48, %55 : vector<8x256xf32>
    %c15_i32 = arith.constant 15 : i32
    %57 = tpu.dynamic_rotate %35 by %c15_i32 dim 1 : vector<8x256xf32>, i32 -> vector<8x256xf32>
    %58 = vector.extract_strided_slice %5 {offsets = [2, 0], sizes = [1, 256], strides = [1, 1]} : vector<8x256xf32> to vector<1x256xf32>
    %59 = vector.broadcast %58 : vector<1x256xf32> to vector<8x256xf32>
    %60 = arith.mulf %57, %59 : vector<8x256xf32>
    %61 = vector.extract_strided_slice %3 {offsets = [0, 2], sizes = [8, 1], strides = [1, 1]} : vector<8x9xf32> to vector<8x1xf32>
    %62 = vector.broadcast %61 : vector<8x1xf32> to vector<8x256xf32>
    %63 = arith.mulf %60, %62 : vector<8x256xf32>
    %64 = arith.addf %56, %63 : vector<8x256xf32>
    %c1_i32 = arith.constant 1 : i32
    %65 = tpu.dynamic_rotate %35 by %c1_i32 dim 1 : vector<8x256xf32>, i32 -> vector<8x256xf32>
    %66 = vector.extract_strided_slice %5 {offsets = [3, 0], sizes = [1, 256], strides = [1, 1]} : vector<8x256xf32> to vector<1x256xf32>
    %67 = vector.broadcast %66 : vector<1x256xf32> to vector<8x256xf32>
    %68 = arith.mulf %65, %67 : vector<8x256xf32>
    %69 = vector.extract_strided_slice %3 {offsets = [0, 3], sizes = [8, 1], strides = [1, 1]} : vector<8x9xf32> to vector<8x1xf32>
    %70 = vector.broadcast %69 : vector<8x1xf32> to vector<8x256xf32>
    %71 = arith.mulf %68, %70 : vector<8x256xf32>
    %72 = arith.addf %64, %71 : vector<8x256xf32>
    %c255_i32 = arith.constant 255 : i32
    %73 = tpu.dynamic_rotate %35 by %c255_i32 dim 1 : vector<8x256xf32>, i32 -> vector<8x256xf32>
    %74 = vector.extract_strided_slice %5 {offsets = [4, 0], sizes = [1, 256], strides = [1, 1]} : vector<8x256xf32> to vector<1x256xf32>
    %75 = vector.broadcast %74 : vector<1x256xf32> to vector<8x256xf32>
    %76 = arith.mulf %73, %75 : vector<8x256xf32>
    %77 = vector.extract_strided_slice %3 {offsets = [0, 5], sizes = [8, 1], strides = [1, 1]} : vector<8x9xf32> to vector<8x1xf32>
    %78 = vector.broadcast %77 : vector<8x1xf32> to vector<8x256xf32>
    %79 = arith.mulf %76, %78 : vector<8x256xf32>
    %80 = arith.addf %72, %79 : vector<8x256xf32>
    %c241_i32 = arith.constant 241 : i32
    %81 = tpu.dynamic_rotate %35 by %c241_i32 dim 1 : vector<8x256xf32>, i32 -> vector<8x256xf32>
    %82 = vector.extract_strided_slice %5 {offsets = [5, 0], sizes = [1, 256], strides = [1, 1]} : vector<8x256xf32> to vector<1x256xf32>
    %83 = vector.broadcast %82 : vector<1x256xf32> to vector<8x256xf32>
    %84 = arith.mulf %81, %83 : vector<8x256xf32>
    %85 = vector.extract_strided_slice %3 {offsets = [0, 6], sizes = [8, 1], strides = [1, 1]} : vector<8x9xf32> to vector<8x1xf32>
    %86 = vector.broadcast %85 : vector<8x1xf32> to vector<8x256xf32>
    %87 = arith.mulf %84, %86 : vector<8x256xf32>
    %88 = arith.addf %80, %87 : vector<8x256xf32>
    %c240_i32 = arith.constant 240 : i32
    %89 = tpu.dynamic_rotate %35 by %c240_i32 dim 1 : vector<8x256xf32>, i32 -> vector<8x256xf32>
    %90 = vector.extract_strided_slice %5 {offsets = [6, 0], sizes = [1, 256], strides = [1, 1]} : vector<8x256xf32> to vector<1x256xf32>
    %91 = vector.broadcast %90 : vector<1x256xf32> to vector<8x256xf32>
    %92 = arith.mulf %89, %91 : vector<8x256xf32>
    %93 = vector.extract_strided_slice %3 {offsets = [0, 7], sizes = [8, 1], strides = [1, 1]} : vector<8x9xf32> to vector<8x1xf32>
    %94 = vector.broadcast %93 : vector<8x1xf32> to vector<8x256xf32>
    %95 = arith.mulf %92, %94 : vector<8x256xf32>
    %96 = arith.addf %88, %95 : vector<8x256xf32>
    %c239_i32 = arith.constant 239 : i32
    %97 = tpu.dynamic_rotate %35 by %c239_i32 dim 1 : vector<8x256xf32>, i32 -> vector<8x256xf32>
    %98 = vector.extract_strided_slice %5 {offsets = [7, 0], sizes = [1, 256], strides = [1, 1]} : vector<8x256xf32> to vector<1x256xf32>
    %99 = vector.broadcast %98 : vector<1x256xf32> to vector<8x256xf32>
    %100 = arith.mulf %97, %99 : vector<8x256xf32>
    %101 = vector.extract_strided_slice %3 {offsets = [0, 8], sizes = [8, 1], strides = [1, 1]} : vector<8x9xf32> to vector<8x1xf32>
    %102 = vector.broadcast %101 : vector<8x1xf32> to vector<8x256xf32>
    %103 = arith.mulf %100, %102 : vector<8x256xf32>
    %104 = arith.addf %96, %103 : vector<8x256xf32>
    %cst_6 = arith.constant 0.00999999977 : f32
    %105 = vector.broadcast %cst_6 : f32 to vector<8x256xf32>
    %106 = arith.mulf %105, %104 : vector<8x256xf32>
    %107 = arith.maximumf %104, %106 : vector<8x256xf32>
    %c0_7 = arith.constant 0 : index
    %c0_8 = arith.constant 0 : index
    %c0_9 = arith.constant 0 : index
    %108 = vector.load %arg5[%c0_7, %c0_8, %c0_9] : memref<1x8x256xf32, #tpu.memory_space<vmem>>, vector<1x8x256xf32>
    %109 = vector.shape_cast %108 : vector<1x8x256xf32> to vector<8x256xf32>
    %110 = vector.shape_cast %107 : vector<8x256xf32> to vector<1x8x256xf32>
    tpu.vector_store %arg5[%c0_7, %c0_8, %c0_9], %110 {strides = array<i32>} : memref<1x8x256xf32, #tpu.memory_space<vmem>>, vector<1x8x256xf32>,
    return
  }
  func.func @transform_0(%arg0: i32, %arg1: i32) -> (i32, i32, i32) {
    %c0_i32 = arith.constant 0 : i32
    %c0_i32_0 = arith.constant 0 : i32
    %c0_i32_1 = arith.constant 0 : i32
    return %arg0, %c0_i32, %c0_i32_0 : i32, i32, i32
  }
  func.func @transform_1(%arg0: i32, %arg1: i32) -> (i32, i32) {
    %c0_i32 = arith.constant 0 : i32
    %c0_i32_0 = arith.constant 0 : i32
    return %arg1, %c0_i32 : i32, i32
  }
  func.func @transform_2(%arg0: i32, %arg1: i32) -> (i32, i32) {
    %c0_i32 = arith.constant 0 : i32
    %c0_i32_0 = arith.constant 0 : i32
    %c0_i32_1 = arith.constant 0 : i32
    return %c0_i32, %c0_i32_0 : i32, i32
  }
  func.func @transform_3(%arg0: i32, %arg1: i32) -> (i32, i32, i32) {
    %c0_i32 = arith.constant 0 : i32
    %c0_i32_0 = arith.constant 0 : i32
    return %arg0, %arg1, %c0_i32 : i32, i32, i32
  }
}

</mosaic_0001>

<bundles_post_ra>
// kernel: ssconv_forward.1
= control target key start
LH: loop header
LB: loop body
LE: loop exit
PB: predicated region body
PF: predicated region fallthrough
CT: control target
= control target key end

     0   :  { %s790_s12 = smov 0   ;;  %s792_s13 = smov 0   ;;  %s944_s0 = inlined_call_operand.vmem [shape: f32[2,4,256], index: 0, kind: input, shape index: {}]   ;;  %s945_s1 = inlined_call_operand.vmem [shape: f32[8,15], index: 1, kind: input, shape index: {}]   ;;  %s946_s2 = inlined_call_operand.vmem [shape: f32[8,256], index: 2, kind: input, shape index: {}]   ;;  %s947_s3 = inlined_call_operand.vmem [shape: f32[2,8,256], index: 3, kind: output, shape index: {}]  }
   0x1   :  { %s794_s14 = smov 0  }
   0x2 LB: > { %s25_s15 = sadd.s32 1, %s741_s13  ;;  %p652_p0 = scmp.ge.s32.totalorder %s745_s14, 1  ;;  %s745_s14 = sphi %s794_s14, %s13_s14   ;;  %s741_s13 = sphi %s792_s13, %s949_s13   ;;  %s737_s12 = sphi %s790_s12, %s948_s12  }
   0x3   : > { %p27_p1 = scmp.ge.s32.totalorder %s25_s15, 2  ;;  %p160_p2 = scmp.lt.s32.totalorder %s745_s14, 3 }
   0x5   : > { %s951_s15 = smov (%p27_p1, %s25_s15), 0  ;;  %p161_p3 = pnand %p652_p0, %p160_p2 }
   0x6   : > { %v210_v0 = vld [vmem:[%s945_s1] sm:$0xff] (!%p161_p3)  ;;  %v747_v1 = vmov (!%p161_p3), 1   ;;  %v748_v2 = vmov (!%p161_p3), 0   ;;  %v749_v3 = vmov (!%p161_p3), 2   ;;  %v750_v4 = vmov (!%p161_p3), 4   ;;  %p192_p4 = scmp.lt.s32.totalorder (!%p161_p3), %s737_s12, 1 }
   0x7   : > { %164 = sbr.rel (%p161_p3) target bundleno = 337 (0x151), region = 32  ;;  %710 = vset.pattern.permute.xlu1 (!%p161_p3), %v747_v1  ;;  %708 = vset.pattern.permute.xlu0 (!%p161_p3), %v748_v2  ;;  %v751_v5 = vmov (!%p161_p3), 3   ;;  %v752_v6 = vmov (!%p161_p3), 9   ;;  %v753_v7 = vmov (!%p161_p3), 14   ;;  %v754_v8 = vmov (!%p161_p3), 6   ;;  %s762_s22 = smov (!%p161_p3), 111  }
   0x8   : > { %247 = vperm.xlu1 (!%p161_p3), %710, %v210_v0   ;;  %216 = vperm.xlu0 (!%p161_p3), %708, %v210_v0   ;;  %v755_v9 = vmov (!%p161_p3), 7   ;;  %v756_v10 = vmov (!%p161_p3), 5   ;;  %v757_v11 = vmov (!%p161_p3), 8   ;;  %v758_v12 = vmov (!%p161_p3), 10   ;;  %s763_s23 = smov (!%p161_p3), 17   ;;  %s764_s24 = smov (!%p161_p3), 16  }
   0x9   : > { %v759_v13 = vmov (!%p161_p3), 11   ;;  %v760_v14 = vmov (!%p161_p3), 12   ;;  %v761_v15 = vmov (!%p161_p3), 13   ;;  %v220_v16 = vlaneseq (!%p161_p3)  ;;  %s765_s25 = smov (!%p161_p3), 15   ;;  %s766_s26 = smov (!%p161_p3), 1  }
   0xa   : > { %s767_s27 = smov (!%p161_p3), 127   ;;  %s768_s28 = smov (!%p161_p3), 113  }
   0xb   : > { %v221_v17 = vshrl.u32 (!%p161_p3), %v220_v16, 7  ;;  %s769_s29 = smov (!%p161_p3), 112  }
   0xc   : > { %711 = vset.pattern.permute.xlu1 (!%p161_p3), %v749_v3  ;;  %709 = vset.pattern.permute.xlu0 (!%p161_p3), %v750_v4 }
   0xd   : > { %273 = vperm.xlu1 (!%p161_p3), %711, %v210_v0   ;;  %241 = vperm.xlu0 (!%p161_p3), %709, %v210_v0   ;;  %v822_v18 = vsub.s32 (!%p161_p3), 0, %v221_v17  ;;  %v824_v19 = vsub.s32 (!%p161_p3), 4, %v221_v17  ;;  %v826_v21 = vsub.s32 (!%p161_p3), 1, %v221_v17  ;;  %v828_v22 = vsub.s32 (!%p161_p3), 5, %v221_v17 }
   0xe   : > { %s953_s12 = smov (!%p192_p4, %s737_s12), 1  ;;  %v832_v25 = vsub.s32 2, %v221_v17  ;;  %v834_v26 = vsub.s32 6, %v221_v17  ;;  %v838_v29 = vsub.s32 3, %v221_v17  ;;  %v840_v30 = vsub.s32 7, %v221_v17 }
   0xf   : > { %s659_s18 = sshll.u32 %s953_s12, 3  ;;  %s660_s7 = sshll.u32 %s953_s12, 4 }
  0x10   : > { %s196_s21 = scalar_lea.vmem %s944_s0, %s659_s18  ;;  %s209_s10 = scalar_lea.vmem %s947_s3, %s660_s7 }
  0x11   : > { %712 = vset.pattern.permute.xlu1 %v751_v5  ;;  %713 = vset.pattern.permute.xlu0 %v752_v6  ;;  %v213_v20 = vld [vmem:[%s196_s21] sm:$0xff] }
  0x12   : > { %299 = vperm.xlu1 %712, %v210_v0   ;;  %329 = vperm.xlu0 %713, %v210_v0   ;;  %v223_v23 = vrot.slane %v213_v20, %v822_v18  ;;  %v227_v24 = vrot.slane %v213_v20, %v824_v19  ;;  %v253_v27 = vrot.slane %v213_v20, %v826_v21 }
  0x13   : > { %v257_v28 = vrot.slane %v213_v20, %v828_v22  ;;  %v279_v35 = vrot.slane %v213_v20, %v832_v25  ;;  %v283_v36 = vrot.slane %v213_v20, %v834_v26  ;;  %v305_v39 = vrot.slane %v213_v20, %v838_v29 }
  0x14   : > { %v233_v33 = vrot.slane %v223_v23, %v822_v18  ;;  %v237_v34 = vrot.slane %v227_v24, %v822_v18  ;;  %v263_v37 = vrot.slane %v253_v27, %v826_v21  ;;  %v309_v40 = vrot.slane %v213_v20, %v840_v30  ;;  %v862_v24 = vld [vmem:[%s946_s2] sm:$0xff]  ;;  %v867_v27 = vld [vmem:[%s946_s2 + $0x8] sm:$0xff] }
  0x15   : > { %v267_v38 = vrot.slane %v257_v28, %v826_v21  ;;  %v289_v43 = vrot.slane %v279_v35, %v832_v25  ;;  %v293_v44 = vrot.slane %v283_v36, %v832_v25  ;;  %v315_v51 = vrot.slane %v305_v39, %v838_v29 }
  0x16   : > { %714 = vset.pattern.permute.xlu1 %v753_v7  ;;  %716 = vset.pattern.permute.xlu0 %v754_v8  ;;  %v319_v52 = vrot.slane %v309_v40, %v838_v29  ;;  %v857_v20 = vand.u32 127, %v220_v16  ;;  %v352_v16 = vrot.slane %v862_v24, %v822_v18  ;;  %v377_v35 = vrot.slane %v862_v24, %v826_v21 }
  0x17   : > { %335 = vperm.xlu1 %714, %v210_v0   ;;  %385 = vperm.xlu0 %716, %v210_v0   ;;  %v381_v36 = vrot.slane %v867_v27, %v826_v21 }
  0x18   : > { %vm346_vm0 = vcmp.lt.s32.totalorder %v857_v20, 17  ;;  %vm371_vm1 = vcmp.lt.s32.totalorder %v857_v20, 16  ;;  %vm396_vm2 = vcmp.lt.s32.totalorder %v857_v20, 15  ;;  %vm421_vm3 = vcmp.lt.s32.totalorder %v857_v20, 1 }
  0x19   : > { %vm446_vm4 = vcmp.lt.s32.totalorder %v857_v20, 127  ;;  %vm471_vm5 = vcmp.lt.s32.totalorder %v857_v20, 113  ;;  %vm496_vm6 = vcmp.lt.s32.totalorder %v857_v20, 112  ;;  %vm521_vm7 = vcmp.lt.s32.totalorder %v857_v20, 111 }
  0x1b   : > { %717 = vset.pattern.permute.xlu0 %v755_v9  ;;  %715 = vset.pattern.permute.xlu1 %v756_v10 }
  0x1c   : > { %410 = vperm.xlu0 %717, %v210_v0   ;;  %360 = vperm.xlu1 %715, %v210_v0  }
  0x20   : > { %718 = vset.pattern.permute.xlu0 %v757_v11 }
  0x21   : > { %435 = vperm.xlu0 %718, %v210_v0  }
  0x25   : > { %719 = vset.pattern.permute.xlu0 %v758_v12 }
  0x26   : > { %460 = vperm.xlu0 %719, %v210_v0  }
  0x2a   : > { %720 = vset.pattern.permute.xlu0 %v759_v13 }
  0x2b   : > { %485 = vperm.xlu0 %720, %v210_v0  }
  0x2f   : > { %721 = vset.pattern.permute.xlu0 %v760_v14 }
  0x30   : > { %510 = vperm.xlu0 %721, %v210_v0  }
  0x34   : > { %722 = vset.pattern.permute.xlu0 %v761_v15 }
  0x35   : > { %535 = vperm.xlu0 %722, %v210_v0  }
  0x87   : > { %v248_v31 = vpop.permute.xlu1 %247  ;;  %v217_v32 = vpop.permute.xlu0 %216 }
  0x88   : > { %v238_v41 = vmul.f32 %v233_v33, %v217_v32  ;;  %v239_v42 = vmul.f32 %v237_v34, %v217_v32  ;;  %v268_v47 = vmul.f32 %v263_v37, %v248_v31  ;;  %v269_v48 = vmul.f32 %v267_v38, %v248_v31 }
  0x89   : > { %v356_v32 = vrot.slane %v867_v27, %v822_v18 }
  0x8c   : > { %v274_v45 = vpop.permute.xlu1 %273  ;;  %v242_v46 = vpop.permute.xlu0 %241 }
  0x8d   : > { %v244_v49 = vadd.f32 %v242_v46, %v238_v41  ;;  %v245_v50 = vadd.f32 %v242_v46, %v239_v42  ;;  %v294_v53 = vmul.f32 %v289_v43, %v274_v45  ;;  %v295_v54 = vmul.f32 %v293_v44, %v274_v45 }
  0x8e   : > { %v402_v44 = vrot.slane %v862_v24, %v832_v25  ;;  %v406_v45 = vrot.slane %v867_v27, %v832_v25 }
  0x8f   : > { %v270_v55 = vadd.f32 %v268_v47, %v244_v49  ;;  %v271_v56 = vadd.f32 %v269_v48, %v245_v50 }
  0x91   : > { %v300_v57 = vpop.permute.xlu1 %299  ;;  %v296_v58 = vadd.f32 %v294_v53, %v270_v55  ;;  %v297_v59 = vadd.f32 %v295_v54, %v271_v56  ;;  %v330_v9 = vpop.permute.xlu0 %329 }
  0x92   : > { %v320_v60 = vmul.f32 %v315_v51, %v300_v57  ;;  %v321_v61 = vmul.f32 %v319_v52, %v300_v57  ;;  %v427_v51 = vrot.slane %v862_v24, %v838_v29  ;;  %v431_v52 = vrot.slane %v867_v27, %v838_v29 }
  0x94   : > { %v322_v62 = vadd.f32 %v320_v60, %v296_v58  ;;  %v323_v63 = vadd.f32 %v321_v61, %v297_v59  ;;  %v452_v59 = vrot.slane %v862_v24, %v824_v19 }
  0x96   : > { %v324_v0 = vmul.f32 0.01, %v322_v62  ;;  %v325_v1 = vmul.f32 0.01, %v323_v63  ;;  %v336_v4 = vpop.permute.xlu1 %335  ;;  %v386_v11 = vpop.permute.xlu0 %385 }
  0x98   : > { %v326_v2 = vmax.f32 %v322_v62, %v324_v0  ;;  %v327_v3 = vmax.f32 %v323_v63, %v325_v1  ;;  %v456_v63 = vrot.slane %v867_v27, %v824_v19 }
  0x9a   : > { %517 = vrot.lane.b32.xlu0 %v326_v2, %s762_s22  ;;  %340 = vrot.lane.b32.xlu1 %v326_v2, %s763_s23  ;;  %v332_v38 = vmul.f32 %v330_v9, %v326_v2  ;;  %v333_v43 = vmul.f32 %v330_v9, %v327_v3 }
  0x9b   : > { %v361_v5 = vpop.permute.xlu1 %360  ;;  %v411_v13 = vpop.permute.xlu0 %410 }
  0x9c   : > { %v338_v50 = vadd.f32 %v336_v4, %v332_v38  ;;  %v339_v56 = vadd.f32 %v336_v4, %v333_v43 }
  0x9e   : > { %342 = vrot.lane.b32.xlu1 %v327_v3, %s763_s23 }
  0xa0   : > { %v854_v17 = vpop.permute.xlu0 %435 }
  0xa2   : > { %367 = vrot.lane.b32.xlu1 %v326_v2, %s764_s24 }
  0xa5   : > { %v869_v28 = vpop.permute.xlu0 %460 }
  0xa6   : > { %369 = vrot.lane.b32.xlu1 %v327_v3, %s764_s24 }
  0xaa   : > { %392 = vrot.lane.b32.xlu1 %v326_v2, %s765_s25  ;;  %v882_v41 = vpop.permute.xlu0 %485 }
  0xae   : > { %394 = vrot.lane.b32.xlu1 %v327_v3, %s765_s25 }
  0xaf   : > { %v511_v60 = vpop.permute.xlu0 %510 }
  0xb2   : > { %417 = vrot.lane.b32.xlu1 %v326_v2, %s766_s26 }
  0xb6   : > { %419 = vrot.lane.b32.xlu1 %v327_v3, %s766_s26 }
  0xba   : > { %442 = vrot.lane.b32.xlu1 %v326_v2, %s767_s27 }
  0xbe   : > { %444 = vrot.lane.b32.xlu1 %v327_v3, %s767_s27 }
  0xc2   : > { %467 = vrot.lane.b32.xlu1 %v326_v2, %s768_s28 }
  0xc6   : > { %469 = vrot.lane.b32.xlu1 %v327_v3, %s768_s28 }
  0xca   : > { %492 = vrot.lane.b32.xlu1 %v326_v2, %s769_s29 }
  0xce   : > { %494 = vrot.lane.b32.xlu1 %v327_v3, %s769_s29 }
  0xd2   : > { %519 = vrot.lane.b32.xlu1 %v327_v3, %s762_s22 }
 0x10c   : > { %v341_v6 = vpop.permute.xlu1 %340 }
 0x110   : > { %v343_v7 = vpop.permute.xlu1 %342 }
 0x111   : > { %v347_v33 = vsel %vm346_vm0, %v341_v6, %v343_v7  ;;  %v348_v34 = vsel %vm346_vm0, %v343_v7, %v341_v6  ;;  %v477_v6 = vrot.slane %v862_v24, %v828_v22  ;;  %v481_v7 = vrot.slane %v867_v27, %v828_v22 }
 0x112   : > { %v357_v42 = vmul.f32 %v352_v16, %v348_v34  ;;  %v358_v18 = vmul.f32 %v356_v32, %v347_v33  ;;  %v536_v32 = vpop.permute.xlu0 %535  ;;  %v502_v22 = vrot.slane %v862_v24, %v834_v26 }
 0x114   : > { %v368_v8 = vpop.permute.xlu1 %367  ;;  %v363_v53 = vmul.f32 %v361_v5, %v357_v42  ;;  %v364_v54 = vmul.f32 %v361_v5, %v358_v18 }
 0x116   : > { %v365_v4 = vadd.f32 %v363_v53, %v338_v50  ;;  %v366_v5 = vadd.f32 %v364_v54, %v339_v56 }
 0x118   : > { %v370_v10 = vpop.permute.xlu1 %369 }
 0x119   : > { %v372_v39 = vsel %vm371_vm1, %v368_v8, %v370_v10  ;;  %v373_v40 = vsel %vm371_vm1, %v370_v10, %v368_v8 }
 0x11a   : > { %v382_v21 = vmul.f32 %v377_v35, %v373_v40  ;;  %v383_v46 = vmul.f32 %v381_v36, %v372_v39  ;;  %v531_v40 = vrot.slane %v867_v27, %v840_v30 }
 0x11c   : > { %v393_v12 = vpop.permute.xlu1 %392  ;;  %v388_v61 = vmul.f32 %v386_v11, %v382_v21  ;;  %v389_v62 = vmul.f32 %v386_v11, %v383_v46  ;;  %v518_v46 = vpop.permute.xlu0 %517 }
 0x120   : > { %v395_v14 = vpop.permute.xlu1 %394 }
 0x121   : > { %v397_v47 = vsel %vm396_vm2, %v393_v12, %v395_v14  ;;  %v398_v48 = vsel %vm396_vm2, %v395_v14, %v393_v12 }
 0x122   : > { %v407_v57 = vmul.f32 %v402_v44, %v398_v48  ;;  %v408_v58 = vmul.f32 %v406_v45, %v397_v47 }
 0x124   : > { %v418_v15 = vpop.permute.xlu1 %417  ;;  %v413_v19 = vmul.f32 %v411_v13, %v407_v57  ;;  %v414_v8 = vmul.f32 %v411_v13, %v408_v58  ;;  %v506_v13 = vrot.slane %v867_v27, %v834_v26 }
 0x128   : > { %v420_v23 = vpop.permute.xlu1 %419 }
 0x129   : > { %v422_v55 = vsel %vm421_vm3, %v418_v15, %v420_v23  ;;  %v423_v25 = vsel %vm421_vm3, %v420_v23, %v418_v15  ;;  %v390_v15 = vadd.f32 %v388_v61, %v365_v4  ;;  %v391_v23 = vadd.f32 %v389_v62, %v366_v5 }
 0x12a   : > { %v432_v0 = vmul.f32 %v427_v51, %v423_v25  ;;  %v433_v1 = vmul.f32 %v431_v52, %v422_v55 }
 0x12b   : > { %v415_v35 = vadd.f32 %v413_v19, %v390_v15  ;;  %v416_v36 = vadd.f32 %v414_v8, %v391_v23 }
 0x12c   : > { %v443_v31 = vpop.permute.xlu1 %442  ;;  %v439_v16 = vmul.f32 %v854_v17, %v433_v1 }
 0x12e   : > { %v441_v18 = vadd.f32 %v439_v16, %v416_v36 }
 0x130   : > { %v445_v37 = vpop.permute.xlu1 %444 }
 0x131   : > { %v447_v2 = vsel %vm446_vm4, %v443_v31, %v445_v37  ;;  %v448_v3 = vsel %vm446_vm4, %v445_v37, %v443_v31  ;;  %v438_v31 = vmul.f32 %v854_v17, %v432_v0  ;;  %v527_v17 = vrot.slane %v862_v24, %v840_v30 }
 0x132   : > { %v457_v11 = vmul.f32 %v452_v59, %v447_v2  ;;  %v458_v12 = vmul.f32 %v456_v63, %v448_v3 }
 0x133   : > { %v440_v42 = vadd.f32 %v438_v31, %v415_v35 }
 0x134   : > { %v468_v49 = vpop.permute.xlu1 %467  ;;  %v463_v37 = vmul.f32 %v869_v28, %v457_v11  ;;  %v464_v38 = vmul.f32 %v869_v28, %v458_v12 }
 0x136   : > { %v465_v24 = vadd.f32 %v463_v37, %v440_v42  ;;  %v466_v47 = vadd.f32 %v464_v38, %v441_v18 }
 0x138   : > { %v470_v29 = vpop.permute.xlu1 %469 }
 0x139   : > { %v472_v9 = vsel %vm471_vm5, %v468_v49, %v470_v29  ;;  %v473_v10 = vsel %vm471_vm5, %v470_v29, %v468_v49 }
 0x13a   : > { %v482_v33 = vmul.f32 %v477_v6, %v472_v9  ;;  %v483_v34 = vmul.f32 %v481_v7, %v473_v10 }
 0x13c   : > { %v493_v14 = vpop.permute.xlu1 %492  ;;  %v488_v44 = vmul.f32 %v882_v41, %v482_v33  ;;  %v489_v45 = vmul.f32 %v882_v41, %v483_v34 }
 0x13e   : > { %v490_v51 = vadd.f32 %v488_v44, %v465_v24  ;;  %v491_v52 = vadd.f32 %v489_v45, %v466_v47 }
 0x140   : > { %v495_v39 = vpop.permute.xlu1 %494 }
 0x141   : > { %v497_v26 = vsel %vm496_vm6, %v493_v14, %v495_v39  ;;  %v498_v43 = vsel %vm496_vm6, %v495_v39, %v493_v14 }
 0x142   : > { %v507_v28 = vmul.f32 %v502_v22, %v497_v26  ;;  %v508_v21 = vmul.f32 %v506_v13, %v498_v43 }
 0x144   : > { %v513_v48 = vmul.f32 %v511_v60, %v507_v28  ;;  %v514_v30 = vmul.f32 %v511_v60, %v508_v21  ;;  %v520_v27 = vpop.permute.xlu1 %519 }
 0x145   : > { %v522_v49 = vsel %vm521_vm7, %v518_v46, %v520_v27  ;;  %v523_v50 = vsel %vm521_vm7, %v520_v27, %v518_v46 }
 0x146   : > { %v532_v53 = vmul.f32 %v527_v17, %v522_v49  ;;  %v533_v54 = vmul.f32 %v531_v40, %v523_v50  ;;  %v515_v41 = vadd.f32 %v513_v48, %v490_v51  ;;  %v516_v55 = vadd.f32 %v514_v30, %v491_v52 }
 0x148   : > { %v538_v25 = vmul.f32 %v536_v32, %v532_v53  ;;  %v539_v56 = vmul.f32 %v536_v32, %v533_v54 }
 0x14a   : > { %v540_v57 = vadd.f32 %v538_v25, %v515_v41  ;;  %v541_v58 = vadd.f32 %v539_v56, %v516_v55 }
 0x14c   : > { %v542_v59 = vmul.f32 0.01, %v540_v57  ;;  %v543_v60 = vmul.f32 0.01, %v541_v58 }
 0x14e   : > { %v544_v61 = vmax.f32 %v540_v57, %v542_v59  ;;  %v545_v20 = vmax.f32 %v541_v58, %v543_v60 }
 0x150   : > { %546 = vst [vmem:[%s209_s10] sm:$0xff] %v544_v61  ;;  %547 = vst [vmem:[%s209_s10 + $0x8] sm:$0xff] %v545_v20 }
 0x151 PF: > { %s13_s14 = sadd.s32 1, %s745_s14   ;;  %s948_s12 = smov %s741_s13 }
 0x152   : > { %p10_p5 = scmp.ge.s32.totalorder %s13_s14, 4   ;;  %s949_s13 = smov %s951_s15 }
 0x154   :  { %12 = sbr.rel (!%p10_p5) target bundleno = 2 (0x2), region = 65 }

</bundles_post_ra>
